<compile_context>
chip_gen: v5e
topology: v5e:2x2
jax: 0.10.0
libtpu: 0.0.40
codegen_flags: <defaults>
</compile_context>

<pallas_src>
import jax
import jax.numpy as jnp
import numpy as np
from jax.experimental import pallas as pl
from jax.experimental.pallas import tpu as pltpu

NEG_BIG = -1e30  # softmax mask for padded word lanes (avoid -inf -> NaN risk)


# ----------------------------------------------------------------------------
# Pallas kernel: one fused matmul + softmax + invalid-word filter
# ----------------------------------------------------------------------------
def wordle_kernel(x_ref, w_ref, out_ref):
    # x_ref : (8, 128)  row 0 = [x0 | x1 | x2 | 1.0 | 0...], row 1 = [0... | mask(x1!=0) | 0...]
    # w_ref : (128, Wp) rows 0-56 = fused linear chain, row 57 = fused bias
    #                   (padded cols = -1e30), rows 58-83 = (1 - letter_filters)
    # out_ref: (1, Wp)
    f32 = jnp.float32

    res = jnp.dot(x_ref[...], w_ref[...], preferred_element_type=f32)  # (8, Wp)
    logits = res[0:1, :]   # (1, Wp)  padded lanes hold -1e30
    count = res[1:2, :]    # (1, Wp)  #invalid letters present in each word

    # Softmax over the word dimension (torch Softmax(dim=0) on the 1-D vector).
    m = jnp.max(logits, axis=1, keepdims=True)
    e = jnp.exp(logits - m)
    p = e / jnp.sum(e, axis=1, keepdims=True)

    # InvalidWordProcessorLayer: zero out words containing any invalid letter.
    factor = jnp.where(count == 0.0, f32(1.0), f32(0.0))

    # TODO(synk): torch.nn.Dropout is stochastic in train mode; treated here as
    # eval-mode identity (required for the offline weight folding).
    out_ref[...] = p * factor


# ----------------------------------------------------------------------------
# Offline parameter folding (done once, outside the per-call path)
# ----------------------------------------------------------------------------
def prepare_wordle_weights(params, letter_filters):
    """Fold the whole linear chain + letter filters into one (128, Wp) matrix."""
    W = letter_filters.shape[1]
    Wp = ((W + 127) // 128) * 128  # lane-dense output width

    wh1 = params["wh1"]  # (57, H), stored as (in, out)
    # Fused linear chain: concat(x0,x1,x2) @ W_fused + b_fused == full torch chain.
    w_fused = jnp.concatenate(
        [params["wva"] @ wh1[:26, :],
         params["wia"] @ wh1[26:52, :],
         params["wcw"] @ wh1[52:57, :]],
        axis=0,
    ) @ params["wh2"]                                         # (57, W)
    b_fused = (params["bva"] @ wh1[:26, :]
               + params["bia"] @ wh1[26:52, :]
               + params["bcw"] @ wh1[52:57, :]
               + params["bh1"]) @ params["wh2"] + params["bh2"]   # (W,)
    # NOTE: the num_turns_left Linear is computed in the torch forward but its
    # output is never used downstream, so it is dropped here.

    complement = 1.0 - letter_filters  # (26, W); letter_filters is exactly 0/1

    w_merged = jnp.zeros((128, Wp), jnp.float32)
    w_merged = w_merged.at[0:57, :W].set(w_fused)
    bias_row = jnp.full((Wp,), NEG_BIG, jnp.float32).at[:W].set(b_fused)
    w_merged = w_merged.at[57, :].set(bias_row)          # bias lane (x lane 57 = 1.0)
    w_merged = w_merged.at[58:84, :W].set(complement)    # filter rows (mask lanes 58..83)
    return w_merged, W, Wp


# ----------------------------------------------------------------------------
# Per-call wrapper
# ----------------------------------------------------------------------------
def wordle_forward(x0, x1, x2, x3, w_merged, num_words, Wp):
    del x3  # unused in the torch forward's output as well
    x_slab = jnp.zeros((8, 128), jnp.float32)
    x_slab = (x_slab.at[0, 0:26].set(x0)
                     .at[0, 26:52].set(x1)
                     .at[0, 52:57].set(x2)
                     .at[0, 57].set(1.0))                       # bias lane
    x_slab = x_slab.at[1, 58:84].set((x1 != 0.0).astype(jnp.float32))  # invalid mask

    vmem = pl.BlockSpec(memory_space=pltpu.MemorySpace.VMEM)
    out = pl.pallas_call(
        wordle_kernel,
        out_shape=jax.ShapeDtypeStruct((1, Wp), jnp.float32),
        in_specs=[vmem, vmem],
        out_specs=vmem,
    )(x_slab, w_merged)
    return out[0, :num_words]


# ----------------------------------------------------------------------------
# Pure-JAX reference (mirrors the PyTorch forward exactly, no folding)
# ----------------------------------------------------------------------------
def wordle_reference(x0, x1, x2, x3, params, letter_filters):
    yv = x0 @ params["wva"] + params["bva"]
    yi = x1 @ params["wia"] + params["bia"]
    yc = x2 @ params["wcw"] + params["bcw"]
    _yt = x3 @ params["wtl"] + params["btl"]  # computed but unused, as in PyTorch
    y = jnp.concatenate([yv, yi, yc], axis=0)
    h = y @ params["wh1"] + params["bh1"]
    logits = h @ params["wh2"] + params["bh2"]
    p = jax.nn.softmax(logits, axis=0)
    eff = jnp.where(x1[:, None] != 0.0, letter_filters, 1.0)
    return p * jnp.prod(eff, axis=0)


# ----------------------------------------------------------------------------
# Main
# ----------------------------------------------------------------------------
if __name__ == "__main__":
    key = jax.random.PRNGKey(0)
    num_words = 64
    hidden_multiplier = 4           # small but structurally identical to default 26
    hidden = 57 * hidden_multiplier

    # Deterministic synthetic word list (5-letter tuples of letter indices 0..25).
    k_words, key = jax.random.split(key)
    word_arr = np.asarray(jax.random.randint(k_words, (num_words, 5), 0, 26))
    words = [tuple(int(l) for l in w) for w in word_arr]

    # letter_filters[letter, word] = 0 if word contains letter else 1
    lf = np.ones((26, num_words), dtype=np.float32)
    for w_idx, word in enumerate(words):
        for letter in word:
            lf[letter, w_idx] = 0.0
    letter_filters = jnp.asarray(lf)

    # Deterministic parameter init (weights stored as (in, out)).
    def init(key, shape, scale=0.1):
        return scale * jax.random.normal(key, shape, dtype=jnp.float32)

    keys = jax.random.split(key, 13)
    params = {
        "wva": init(keys[0], (26, 26)),  "bva": init(keys[1], (26,)),
        "wia": init(keys[2], (26, 26)),  "bia": init(keys[3], (26,)),
        "wcw": init(keys[4], (5, 5)),    "bcw": init(keys[5], (5,)),
        "wtl": init(keys[6], (1, 1)),    "btl": init(keys[7], (1,)),
        "wh1": init(keys[8], (57, hidden)),         "bh1": init(keys[9], (hidden,)),
        "wh2": init(keys[10], (hidden, num_words)), "bh2": init(keys[11], (num_words,)),
    }

    # Example inputs: x = (valid_letters[26], invalid_letters[26], word_state[5], turns[1])
    ik = jax.random.split(keys[12], 4)
    x0 = jax.random.uniform(ik[0], (26,), dtype=jnp.float32)
    x1 = jax.random.bernoulli(ik[1], 0.2, (26,)).astype(jnp.float32)
    x2 = jax.random.uniform(ik[2], (5,), dtype=jnp.float32)
    x3 = jax.random.uniform(ik[3], (1,), dtype=jnp.float32)

    # Offline fold (load-time), then per-call kernel invocation.
    w_merged, W, Wp = prepare_wordle_weights(params, letter_filters)
    out = wordle_forward(x0, x1, x2, x3, w_merged, W, Wp)
    out = jax.block_until_ready(out)

    ref = wordle_reference(x0, x1, x2, x3, params, letter_filters)
    assert out.shape == (num_words,)
    np.testing.assert_allclose(np.asarray(out), np.asarray(ref), rtol=1e-5, atol=1e-5)

    print("KERNEL_OK")
</pallas_src>

<mosaic_0001>
module attributes {stable_mosaic.version = 11 : i64} {
  func.func @wordle_kernel(%arg0: memref<8x128xf32, #tpu.memory_space<vmem>>, %arg1: memref<128x128xf32, #tpu.memory_space<vmem>>, %arg2: memref<1x128xf32, #tpu.memory_space<vmem>>) attributes {dimension_semantics = [], scalar_prefetch = 0 : i64, scratch_operands = 0 : i64, tpu.core_type = #tpu.core_type<tc>} {
    %c0 = arith.constant 0 : index
    %c0_0 = arith.constant 0 : index
    %0 = vector.load %arg0[%c0, %c0_0] : memref<8x128xf32, #tpu.memory_space<vmem>>, vector<8x128xf32>
    %c0_1 = arith.constant 0 : index
    %c0_2 = arith.constant 0 : index
    %1 = vector.load %arg1[%c0_1, %c0_2] : memref<128x128xf32, #tpu.memory_space<vmem>>, vector<128x128xf32>
    %cst = arith.constant dense<0.000000e+00> : vector<8x128xf32>
    %2 = tpu.matmul %0, %1, %cst {dimension_numbers = #tpu.dot_dimension_numbers<[1], [0], [0], [1], [0, 0, 1, 1], [], []>} : vector<8x128xf32>, vector<128x128xf32>, vector<8x128xf32> -> vector<8x128xf32>
    %3 = vector.extract_strided_slice %2 {offsets = [0, 0], sizes = [1, 128], strides = [1, 1]} : vector<8x128xf32> to vector<1x128xf32>
    %4 = vector.extract_strided_slice %2 {offsets = [1, 0], sizes = [1, 128], strides = [1, 1]} : vector<8x128xf32> to vector<1x128xf32>
    %cst_3 = arith.constant dense<0xFF800000> : vector<1xf32>
    %5 = vector.multi_reduction <maximumf>, %3, %cst_3 [1] : vector<1x128xf32> to vector<1xf32>
    %6 = vector.shape_cast %5 : vector<1xf32> to vector<1x1xf32>
    %7 = vector.broadcast %6 : vector<1x1xf32> to vector<1x128xf32>
    %8 = arith.subf %3, %7 : vector<1x128xf32>
    %9 = math.exp %8 : vector<1x128xf32>
    %cst_4 = arith.constant dense<0.000000e+00> : vector<1xf32>
    %10 = vector.multi_reduction <add>, %9, %cst_4 [1] : vector<1x128xf32> to vector<1xf32>
    %11 = vector.shape_cast %10 : vector<1xf32> to vector<1x1xf32>
    %12 = vector.broadcast %11 : vector<1x1xf32> to vector<1x128xf32>
    %13 = arith.divf %9, %12 : vector<1x128xf32>
    %cst_5 = arith.constant 0.000000e+00 : f32
    %14 = vector.broadcast %cst_5 : f32 to vector<1x128xf32>
    %15 = arith.cmpf oeq, %4, %14 : vector<1x128xf32>
    %cst_6 = arith.constant 1.000000e+00 : f32
    %cst_7 = arith.constant 0.000000e+00 : f32
    %16 = vector.broadcast %cst_6 : f32 to vector<1x128xf32>
    %17 = vector.broadcast %cst_7 : f32 to vector<1x128xf32>
    %18 = arith.select %15, %16, %17 : vector<1x128xi1>, vector<1x128xf32>
    %19 = arith.mulf %13, %18 : vector<1x128xf32>
    %c0_8 = arith.constant 0 : index
    %c0_9 = arith.constant 0 : index
    %20 = vector.load %arg2[%c0_8, %c0_9] : memref<1x128xf32, #tpu.memory_space<vmem>>, vector<1x128xf32>
    tpu.vector_store %arg2[%c0_8, %c0_9], %19 {strides = array<i32>} : memref<1x128xf32, #tpu.memory_space<vmem>>, vector<1x128xf32>,
    return
  }
}

</mosaic_0001>

<bundles_post_ra>
// kernel: tpu_custom_call.1
= control target key start
LH: loop header
LB: loop body
LE: loop exit
PB: predicated region body
PF: predicated region fallthrough
CT: control target
= control target key end

     0   :  { %7 = vsyncpa [#allocation3], 0  ;;  %s247_s0 = inlined_call_operand.hbm [shape: f32[8,128], index: 0, kind: input, shape index: {}]   ;;  %s248_s1 = inlined_call_operand.hbm [shape: f32[128,128], index: 1, kind: input, shape index: {}]   ;;  %s249_s2 = inlined_call_operand.hbm [shape: f32[1,128], index: 2, kind: output, shape index: {}]  }
   0x1   :  { %8 = vsyncpa [#allocation6], 0 }
   0x2   :  { %9 = vsyncpa [#allocation4], 0  ;;  %s15_s11 = sshll.u32 %s247_s0, 4  ;;  %s217_s12 = smov [#allocation2]   ;;  %s16_s11 = int_to_ptr.hbm [resolvable:$true] %s15_s11 }
   0x3   :  { %s17_s13 = sshll.u32 %s217_s12, 4  ;;  %s25_s16 = sshll.u32 %s248_s1, 4  ;;  %s18_s13 = int_to_ptr.vmem [resolvable:$true] %s17_s13  ;;  %s26_s16 = int_to_ptr.hbm [resolvable:$true] %s25_s16 }
   0x4   :  { %20 = dma.hbm_to_vmem [thread:$0]  %s16_s11, 128, %s18_s13, [#allocation3]  }
   0x5   :  { %s218_s17 = smov [#allocation5]   ;;  %s219_s19 = smov 128  }
   0x6   :  { %s27_s18 = sshll.u32 %s218_s17, 4  ;;  %s220_s20 = smov 8   ;;  %s28_s18 = int_to_ptr.vmem [resolvable:$true] %s27_s18 }
   0x7   :  { %33 = dma.hbm_to_vmem [thread:$0]  %s26_s16, 2048, %s28_s18, [#allocation6], %s219_s19, %s219_s19, %s220_s20  }
   0x8   :  { %211 = dma.done.wait [#allocation3], 128  }
   0x9   :  { %212 = vsyncadd [#allocation3], 4294967168 }
   0xa   :  { %213 = dma.done.wait [#allocation6], 2048  }
   0xb   :  { %214 = vsyncadd [#allocation6], 4294965248  ;;  %v58_v0 = vld [vmem:[#allocation5 + $0x78] sm:$0xff]  ;;  %v57_v1 = vld [vmem:[#allocation5 + $0x70] sm:$0xff]  ;;  %vm79_vm0 = vcmask 1040384   ;;  %v221_v32 = vmov 0.0  }
   0xc   :  { %59 = vmatpush.msra.mxu0 %v58_v0  ;;  %v56_v2 = vld [vmem:[#allocation5 + $0x68] sm:$0xff]  ;;  %v55_v3 = vld [vmem:[#allocation5 + $0x60] sm:$0xff]  ;;  %v54_v4 = vld [vmem:[#allocation5 + $0x58] sm:$0xff]  ;;  %s222_s0 = smov [#allocation7]   ;;  %s118_s23 = sshll.u32 %s249_s2, 4  ;;  %s119_s23 = int_to_ptr.hbm [resolvable:$true] %s118_s23 }
   0xd   :  { %v53_v5 = vld [vmem:[#allocation5 + $0x50] sm:$0xff]  ;;  %v52_v6 = vld [vmem:[#allocation5 + $0x48] sm:$0xff]  ;;  %v51_v7 = vld [vmem:[#allocation5 + $0x40] sm:$0xff]  ;;  %s116_s1 = sshll.u32 %s222_s0, 4  ;;  %s117_s1 = int_to_ptr.vmem [resolvable:$true] %s116_s1 }
   0xe   :  { %60 = vmatpush.msra.mxu0 %v57_v1  ;;  %v50_v8 = vld [vmem:[#allocation5 + $0x38] sm:$0xff]  ;;  %v49_v9 = vld [vmem:[#allocation5 + $0x30] sm:$0xff]  ;;  %v48_v10 = vld [vmem:[#allocation5 + $0x28] sm:$0xff] }
   0xf   :  { %v47_v11 = vld [vmem:[#allocation5 + $0x20] sm:$0xff]  ;;  %v46_v12 = vld [vmem:[#allocation5 + $0x18] sm:$0xff]  ;;  %v45_v13 = vld [vmem:[#allocation5 + $0x10] sm:$0xff] }
  0x10   :  { %61 = vmatpush.msra.mxu0 %v56_v2  ;;  %v44_v14 = vld [vmem:[#allocation5 + $0x8] sm:$0xff]  ;;  %v43_v15 = vld [vmem:[#allocation5] sm:$0xff]  ;;  %v42_v16 = vld [vmem:[#allocation2] sm:$0xff] }
  0x12   :  { %62 = vmatpush.msra.mxu0 %v55_v3 }
  0x14   :  { %63 = vmatpush.msra.mxu0 %v54_v4 }
  0x16   :  { %64 = vmatpush.msra.mxu0 %v53_v5 }
  0x18   :  { %65 = vmatpush.msra.mxu0 %v52_v6 }
  0x1a   :  { %66 = vmatpush.msra.mxu0 %v51_v7 }
  0x1c   :  { %67 = vmatpush.msra.mxu0 %v50_v8 }
  0x1e   :  { %68 = vmatpush.msra.mxu0 %v49_v9 }
  0x20   :  { %69 = vmatpush.msra.mxu0 %v48_v10 }
  0x22   :  { %70 = vmatpush.msra.mxu0 %v47_v11 }
  0x24   :  { %71 = vmatpush.msra.mxu0 %v46_v12 }
  0x26   :  { %72 = vmatpush.msra.mxu0 %v45_v13 }
  0x28   :  { %73 = vmatpush.msra.mxu0 %v44_v14 }
  0x2a   :  { %74 = vmatpush.msra.mxu0 %v43_v15 }
  0x2b   :  { %75 = vmatmul.f32.vlgmr.msra.gmra.mxu0 %v42_v16 }
  0xa8   :  { %v76_v17 = vpop.f32.mrf.mxu0 }
  0xa9   :  { %v80_v18 = vsel %vm79_vm0, %v76_v17, -inf  ;;  %vm104_vm1 = vcmp.eq.f32.partialorder %v76_v17, 0.0 }
  0xaa   :  { %81 = vmax.xlane.f32.xlu0 %v80_v18  ;;  %v105_v33 = vsel %vm104_vm1, 1.0, %v221_v32 }
  0xab   :  { %v107_v37 = vrot.slane %v105_v33, 1 }
 0x11d   :  { %v82_v19 = vpop.xlane.xlu0 %81 }
 0x11e   :  { %v83_v20 = vsub.f32 %v76_v17, %v82_v19 }
 0x120   :  { %v84_v21 = vmul.f32 1.442695, %v83_v20 }
 0x122   :  { %135 = vpow2.f32 %v84_v21 }
 0x128   :  { %v136_v22 = vpop.eup %135 }
 0x129   :  { %v86_v23 = vsel %vm79_vm0, %v136_v22, 0.0 }
 0x12a   :  { %87 = vadd.xlane.f32.xlu0 %v86_v23 }
 0x19d   :  { %v88_v24 = vpop.xlane.xlu0 %87 }
 0x19e   :  { %137 = vrcp.f32 %v88_v24  ;;  %v100_v28 = vand.u32 2147483648, %v88_v24  ;;  %v98_v30 = vand.u32 2147483647, %v88_v24  ;;  %vm94_vm3 = vweird.f32 %v88_v24 }
 0x1a0   :  { %v101_v34 = vor.u32 1.1754944e-38, %v100_v28  ;;  %vm99_vm5 = vcmp.eq.f32.partialorder %v98_v30, 8.507059e+37 }
 0x1a4   :  { %v138_v25 = vpop.eup %137 }
 0x1a5   :  { %v90_v26 = vmul.f32 %v138_v25, %v88_v24  ;;  %vm95_vm2 = vweird.f32 %v138_v25 }
 0x1a6   :  { %vm96_vm4 = vmor %vm94_vm3, %vm95_vm2 }
 0x1a7   :  { %v91_v27 = vsub.f32 1.0, %v90_v26 }
 0x1a9   :  { %v92_v29 = vmul.f32 %v138_v25, %v91_v27 }
 0x1ab   :  { %v93_v31 = vadd.f32 %v138_v25, %v92_v29 }
 0x1ad   :  { %v97_v35 = vsel %vm96_vm4, %v138_v25, %v93_v31 }
 0x1ae   :  { %v102_v36 = vsel %vm99_vm5, %v101_v34, %v97_v35 }
 0x1af   :  { %v103_v38 = vmul.f32 %v136_v22, %v102_v36 }
 0x1b1   :  { %v109_v39 = vmul.f32 %v107_v37, %v103_v38 }
 0x1b3   :  { %110 = vst [vmem:[#allocation7] sm:$0x1] %v109_v39 }
 0x1b4   :  { %121 = dma.vmem_to_hbm [thread:$0]  %s117_s1, 16, %s119_s23, [#allocation4]  }
 0x1b5   :  { %215 = dma.done.wait [#allocation4], 16  }
 0x1b6   :  { %216 = vsyncadd [#allocation4], 4294967280 }
 0x1b7   :  { %126 = vsyncpa [#allocation3], 1 }
 0x1b8   :  { %127 = vsyncpa [#allocation6], 1 }
 0x1b9   :  { %128 = vsyncpa [#allocation4], 1 }

</bundles_post_ra>
